<compile_context>
chip_gen: v5e
topology: v5e:2x2
jax: 0.10.0
libtpu: 0.0.40
codegen_flags: <defaults>
</compile_context>

<pallas_src>
import functools

import numpy as np
import jax
import jax.numpy as jnp
from jax import lax
from jax.experimental import pallas as pl
from jax.experimental.pallas import tpu as pltpu


def _sepconv_kernel(x_ref, scale_ref, shift_ref, w_ref, alpha_ref, mask_ref, o_ref,
                    *, H, W, C, KH, KW, PAD):
    HW = H * W
    x = x_ref[0].astype(jnp.float32)                  # (C, H*W): spatial on lanes

    # BatchNorm folded to per-channel scale/shift; (C, 1) broadcasts over lanes.
    y = x * scale_ref[...] + shift_ref[...]

    # Grouped conv as KH*KW (lane-roll + border-mask + block-diag matmul) taps.
    acc = jnp.zeros((C, HW), jnp.float32)
    for kh in range(KH):
        for kw in range(KW):
            t = kh * KW + kw
            d = (kh - PAD) * W + (kw - PAD)           # flat spatial offset of this tap
            if d == 0:
                tap_in = y                            # centre tap: no shift, mask == 1
            else:
                # shifted[p] = y[(p + d) mod HW]; wrapped positions are zeroed by the mask.
                shifted = pltpu.roll(y, shift=(-d) % HW, axis=1)
                tap_in = shifted * mask_ref[t]        # (C,HW) * (1,HW)
            acc = acc + jnp.dot(w_ref[t], tap_in, preferred_element_type=jnp.float32)

    # PReLU (slopes already in channel-shuffled order) + residual add.
    z = jnp.where(acc >= 0.0, acc, acc * alpha_ref[...])
    o_ref[0] = (x + z).astype(o_ref.dtype)


@functools.partial(jax.jit, static_argnames=("groups", "stride", "padding",
                                             "shuffle_groups", "eps"))
def sepconv_forward(x, conv_weight, bn_gamma, bn_beta, prelu_alpha, *,
                    groups, stride=1, padding=1, shuffle_groups=4, eps=1e-5):
    """Fused SepConv forward: x + channel_shuffle(PReLU(GroupedConv(BN(x))), 4).

    x:           (N, C, H, W)            NCHW, matching the PyTorch module.
    conv_weight: (C, C//groups, KH, KW)  PyTorch OIHW layout, bias=False.
    bn_gamma, bn_beta, prelu_alpha: (C,)
    """
    if stride != 1:
        # TODO(synk): stride > 1 branch (no residual, strided output) not implemented.
        raise NotImplementedError("Only the stride == 1 (residual) path is implemented.")

    N, C, H, W = x.shape
    C_out, cg, KH, KW = conv_weight.shape
    assert C_out == C and cg * groups == C and C % shuffle_groups == 0
    assert KH == KW and 2 * padding == KH - 1, "residual path needs 'same' conv"
    HW = H * W

    xf = x.astype(jnp.float32)

    # Training-mode BatchNorm: per-channel batch statistics over (N, H, W),
    # biased variance (as PyTorch uses for normalization in training mode).
    mean = xf.mean(axis=(0, 2, 3))
    var = xf.var(axis=(0, 2, 3))
    scale = bn_gamma.astype(jnp.float32) * lax.rsqrt(var + eps)
    shift = bn_beta.astype(jnp.float32) - mean * scale

    # Per-tap block-diagonal (C_out, C_in) matrices for the grouped conv,
    # with channel_shuffle(shuffle_groups) folded into the row (output) order.
    wf = conv_weight.astype(jnp.float32)                           # (C, cg, KH, KW)
    w_taps = jnp.zeros((KH * KW, C, C), jnp.float32)
    for g in range(groups):
        blk = jnp.transpose(wf[g * cg:(g + 1) * cg], (2, 3, 0, 1))  # (KH,KW,out,in)
        blk = blk.reshape(KH * KW, cg, cg)
        w_taps = w_taps.at[:, g * cg:(g + 1) * cg, g * cg:(g + 1) * cg].set(blk)

    j = np.arange(C)
    src = (j % shuffle_groups) * (C // shuffle_groups) + j // shuffle_groups
    w_taps = w_taps[:, src, :]                                     # fold channel_shuffle
    alpha = prelu_alpha.astype(jnp.float32)[src].reshape(C, 1)     # shuffled PReLU slopes

    # Static border masks: masks[t, 0, p] == 1 iff tap t of output position p
    # reads an in-image pixel (this realizes the conv's zero padding of BN(x)).
    hh = np.arange(H)[:, None]
    ww = np.arange(W)[None, :]
    masks = np.zeros((KH * KW, 1, HW), np.float32)
    for kh in range(KH):
        for kw in range(KW):
            dh, dw = kh - padding, kw - padding
            m = (hh + dh >= 0) & (hh + dh < H) & (ww + dw >= 0) & (ww + dw < W)
            masks[kh * KW + kw, 0] = m.reshape(-1).astype(np.float32)
    masks = jnp.asarray(masks)

    x_flat = xf.reshape(N, C, HW)          # free view of the NCHW storage

    flops = 2 * N * HW * KH * KW * C * C
    bytes_accessed = (2 * N * C * HW + KH * KW * C * C + KH * KW * HW + 3 * C) * 4

    out_flat = pl.pallas_call(
        functools.partial(_sepconv_kernel, H=H, W=W, C=C, KH=KH, KW=KW, PAD=padding),
        out_shape=jax.ShapeDtypeStruct((N, C, HW), x.dtype),
        grid=(N,),
        in_specs=[
            pl.BlockSpec((1, C, HW), lambda n: (n, 0, 0)),
            pl.BlockSpec((C, 1), lambda n: (0, 0)),
            pl.BlockSpec((C, 1), lambda n: (0, 0)),
            pl.BlockSpec((KH * KW, C, C), lambda n: (0, 0, 0)),
            pl.BlockSpec((C, 1), lambda n: (0, 0)),
            pl.BlockSpec((KH * KW, 1, HW), lambda n: (0, 0, 0)),
        ],
        out_specs=pl.BlockSpec((1, C, HW), lambda n: (n, 0, 0)),
        compiler_params=pltpu.CompilerParams(
            dimension_semantics=("parallel",),   # images independent -> v7x dual-TC sharding
        ),
        cost_estimate=pl.CostEstimate(flops=flops, transcendentals=0,
                                      bytes_accessed=bytes_accessed),
    )(x_flat, scale.reshape(C, 1), shift.reshape(C, 1), w_taps, alpha, masks)

    return out_flat.reshape(N, C, H, W).astype(x.dtype)


if __name__ == "__main__":
    key = jax.random.PRNGKey(0)
    k_x, k_w = jax.random.split(key)

    # Small SepConv config: C_in=C_out=16, 3x3, stride=1, pad=1, groups=4.
    N, C, H, W = 2, 16, 16, 16
    groups, ksize, stride, padding = 4, 3, 1, 1

    x = jax.random.normal(k_x, (N, C, H, W), dtype=jnp.float32)
    conv_w = jax.random.normal(k_w, (C, C // groups, ksize, ksize), dtype=jnp.float32) * 0.1
    gamma = jnp.ones((C,), jnp.float32)            # BatchNorm affine defaults
    beta = jnp.zeros((C,), jnp.float32)
    alpha = jnp.full((C,), 0.25, jnp.float32)      # PReLU default slope

    out = sepconv_forward(x, conv_w, gamma, beta, alpha,
                          groups=groups, stride=stride, padding=padding)
    out = jax.block_until_ready(out)

    # Pure-JAX reference of the PyTorch forward (training-mode BatchNorm).
    eps = 1e-5
    mean = x.mean(axis=(0, 2, 3), keepdims=True)
    var = x.var(axis=(0, 2, 3), keepdims=True)
    xn = (x - mean) / jnp.sqrt(var + eps) * gamma.reshape(1, C, 1, 1) + beta.reshape(1, C, 1, 1)
    y = lax.conv_general_dilated(
        xn, conv_w, window_strides=(stride, stride),
        padding=[(padding, padding), (padding, padding)],
        dimension_numbers=("NCHW", "OIHW", "NCHW"),
        feature_group_count=groups)
    y = jnp.where(y >= 0, y, y * alpha.reshape(1, C, 1, 1))
    y = y.reshape(N, 4, C // 4, H, W).transpose(0, 2, 1, 3, 4).reshape(N, C, H, W)
    ref = x + y

    assert out.shape == x.shape and out.dtype == x.dtype
    max_err = float(jnp.max(jnp.abs(out - ref)))
    assert bool(jnp.allclose(out, ref, atol=2e-2, rtol=2e-2)), max_err
    print("KERNEL_OK")
</pallas_src>

<mosaic_0001>
module attributes {stable_mosaic.version = 11 : i64} {
  func.func @_sepconv_kernel(%arg0: i32, %arg1: memref<1x16x256xf32, #tpu.memory_space<vmem>>, %arg2: memref<16x1xf32, #tpu.memory_space<vmem>>, %arg3: memref<16x1xf32, #tpu.memory_space<vmem>>, %arg4: memref<9x16x16xf32, #tpu.memory_space<vmem>>, %arg5: memref<16x1xf32, #tpu.memory_space<vmem>>, %arg6: memref<9x1x256xf32, #tpu.memory_space<vmem>>, %arg7: memref<1x16x256xf32, #tpu.memory_space<vmem>>) attributes {dimension_semantics = [#tpu.dimension_semantics<parallel>], iteration_bounds = array<i64: 2>, scalar_prefetch = 0 : i64, scratch_operands = 0 : i64, tpu.core_type = #tpu.core_type<tc>, window_params = [{transform_indices = @transform_0, window_bounds = array<i64: 1, 16, 256>}, {pipeline_mode = #tpu.pipeline_mode<synchronous>, transform_indices = @transform_1, window_bounds = array<i64: 16, 1>}, {pipeline_mode = #tpu.pipeline_mode<synchronous>, transform_indices = @transform_2, window_bounds = array<i64: 16, 1>}, {pipeline_mode = #tpu.pipeline_mode<synchronous>, transform_indices = @transform_3, window_bounds = array<i64: 9, 16, 16>}, {pipeline_mode = #tpu.pipeline_mode<synchronous>, transform_indices = @transform_4, window_bounds = array<i64: 16, 1>}, {pipeline_mode = #tpu.pipeline_mode<synchronous>, transform_indices = @transform_5, window_bounds = array<i64: 9, 1, 256>}, {transform_indices = @transform_6, window_bounds = array<i64: 1, 16, 256>}]} {
    %c0 = arith.constant 0 : index
    %c0_0 = arith.constant 0 : index
    %c0_1 = arith.constant 0 : index
    %0 = vector.load %arg1[%c0, %c0_0, %c0_1] : memref<1x16x256xf32, #tpu.memory_space<vmem>>, vector<1x16x256xf32>
    %1 = vector.shape_cast %0 : vector<1x16x256xf32> to vector<16x256xf32>
    %c0_2 = arith.constant 0 : index
    %c0_3 = arith.constant 0 : index
    %2 = vector.load %arg2[%c0_2, %c0_3] : memref<16x1xf32, #tpu.memory_space<vmem>>, vector<16x1xf32>
    %3 = vector.broadcast %2 : vector<16x1xf32> to vector<16x256xf32>
    %4 = arith.mulf %1, %3 : vector<16x256xf32>
    %c0_4 = arith.constant 0 : index
    %c0_5 = arith.constant 0 : index
    %5 = vector.load %arg3[%c0_4, %c0_5] : memref<16x1xf32, #tpu.memory_space<vmem>>, vector<16x1xf32>
    %6 = vector.broadcast %5 : vector<16x1xf32> to vector<16x256xf32>
    %7 = arith.addf %4, %6 : vector<16x256xf32>
    %cst = arith.constant 0.000000e+00 : f32
    %8 = vector.broadcast %cst : f32 to vector<16x256xf32>
    %c17_i32 = arith.constant 17 : i32
    %9 = tpu.dynamic_rotate %7 by %c17_i32 dim 1 : vector<16x256xf32>, i32 -> vector<16x256xf32>
    %c0_6 = arith.constant 0 : index
    %c0_7 = arith.constant 0 : index
    %c0_8 = arith.constant 0 : index
    %10 = vector.load %arg6[%c0_6, %c0_7, %c0_8] : memref<9x1x256xf32, #tpu.memory_space<vmem>>, vector<1x1x256xf32>
    %11 = vector.shape_cast %10 : vector<1x1x256xf32> to vector<1x256xf32>
    %12 = vector.broadcast %11 : vector<1x256xf32> to vector<16x256xf32>
    %13 = arith.mulf %9, %12 : vector<16x256xf32>
    %c0_9 = arith.constant 0 : index
    %c0_10 = arith.constant 0 : index
    %c0_11 = arith.constant 0 : index
    %14 = vector.load %arg4[%c0_9, %c0_10, %c0_11] : memref<9x16x16xf32, #tpu.memory_space<vmem>>, vector<1x16x16xf32>
    %15 = vector.shape_cast %14 : vector<1x16x16xf32> to vector<16x16xf32>
    %cst_12 = arith.constant dense<0.000000e+00> : vector<16x256xf32>
    %16 = tpu.matmul %15, %13, %cst_12 {dimension_numbers = #tpu.dot_dimension_numbers<[1], [0], [0], [1], [0, 0, 1, 1], [], []>} : vector<16x16xf32>, vector<16x256xf32>, vector<16x256xf32> -> vector<16x256xf32>
    %17 = arith.addf %8, %16 : vector<16x256xf32>
    %c16_i32 = arith.constant 16 : i32
    %18 = tpu.dynamic_rotate %7 by %c16_i32 dim 1 : vector<16x256xf32>, i32 -> vector<16x256xf32>
    %c1 = arith.constant 1 : index
    %c0_13 = arith.constant 0 : index
    %c0_14 = arith.constant 0 : index
    %19 = vector.load %arg6[%c1, %c0_13, %c0_14] : memref<9x1x256xf32, #tpu.memory_space<vmem>>, vector<1x1x256xf32>
    %20 = vector.shape_cast %19 : vector<1x1x256xf32> to vector<1x256xf32>
    %21 = vector.broadcast %20 : vector<1x256xf32> to vector<16x256xf32>
    %22 = arith.mulf %18, %21 : vector<16x256xf32>
    %c1_15 = arith.constant 1 : index
    %c0_16 = arith.constant 0 : index
    %c0_17 = arith.constant 0 : index
    %23 = vector.load %arg4[%c1_15, %c0_16, %c0_17] : memref<9x16x16xf32, #tpu.memory_space<vmem>>, vector<1x16x16xf32>
    %24 = vector.shape_cast %23 : vector<1x16x16xf32> to vector<16x16xf32>
    %cst_18 = arith.constant dense<0.000000e+00> : vector<16x256xf32>
    %25 = tpu.matmul %24, %22, %cst_18 {dimension_numbers = #tpu.dot_dimension_numbers<[1], [0], [0], [1], [0, 0, 1, 1], [], []>} : vector<16x16xf32>, vector<16x256xf32>, vector<16x256xf32> -> vector<16x256xf32>
    %26 = arith.addf %17, %25 : vector<16x256xf32>
    %c15_i32 = arith.constant 15 : i32
    %27 = tpu.dynamic_rotate %7 by %c15_i32 dim 1 : vector<16x256xf32>, i32 -> vector<16x256xf32>
    %c2 = arith.constant 2 : index
    %c0_19 = arith.constant 0 : index
    %c0_20 = arith.constant 0 : index
    %28 = vector.load %arg6[%c2, %c0_19, %c0_20] : memref<9x1x256xf32, #tpu.memory_space<vmem>>, vector<1x1x256xf32>
    %29 = vector.shape_cast %28 : vector<1x1x256xf32> to vector<1x256xf32>
    %30 = vector.broadcast %29 : vector<1x256xf32> to vector<16x256xf32>
    %31 = arith.mulf %27, %30 : vector<16x256xf32>
    %c2_21 = arith.constant 2 : index
    %c0_22 = arith.constant 0 : index
    %c0_23 = arith.constant 0 : index
    %32 = vector.load %arg4[%c2_21, %c0_22, %c0_23] : memref<9x16x16xf32, #tpu.memory_space<vmem>>, vector<1x16x16xf32>
    %33 = vector.shape_cast %32 : vector<1x16x16xf32> to vector<16x16xf32>
    %cst_24 = arith.constant dense<0.000000e+00> : vector<16x256xf32>
    %34 = tpu.matmul %33, %31, %cst_24 {dimension_numbers = #tpu.dot_dimension_numbers<[1], [0], [0], [1], [0, 0, 1, 1], [], []>} : vector<16x16xf32>, vector<16x256xf32>, vector<16x256xf32> -> vector<16x256xf32>
    %35 = arith.addf %26, %34 : vector<16x256xf32>
    %c1_i32 = arith.constant 1 : i32
    %36 = tpu.dynamic_rotate %7 by %c1_i32 dim 1 : vector<16x256xf32>, i32 -> vector<16x256xf32>
    %c3 = arith.constant 3 : index
    %c0_25 = arith.constant 0 : index
    %c0_26 = arith.constant 0 : index
    %37 = vector.load %arg6[%c3, %c0_25, %c0_26] : memref<9x1x256xf32, #tpu.memory_space<vmem>>, vector<1x1x256xf32>
    %38 = vector.shape_cast %37 : vector<1x1x256xf32> to vector<1x256xf32>
    %39 = vector.broadcast %38 : vector<1x256xf32> to vector<16x256xf32>
    %40 = arith.mulf %36, %39 : vector<16x256xf32>
    %c3_27 = arith.constant 3 : index
    %c0_28 = arith.constant 0 : index
    %c0_29 = arith.constant 0 : index
    %41 = vector.load %arg4[%c3_27, %c0_28, %c0_29] : memref<9x16x16xf32, #tpu.memory_space<vmem>>, vector<1x16x16xf32>
    %42 = vector.shape_cast %41 : vector<1x16x16xf32> to vector<16x16xf32>
    %cst_30 = arith.constant dense<0.000000e+00> : vector<16x256xf32>
    %43 = tpu.matmul %42, %40, %cst_30 {dimension_numbers = #tpu.dot_dimension_numbers<[1], [0], [0], [1], [0, 0, 1, 1], [], []>} : vector<16x16xf32>, vector<16x256xf32>, vector<16x256xf32> -> vector<16x256xf32>
    %44 = arith.addf %35, %43 : vector<16x256xf32>
    %c4 = arith.constant 4 : index
    %c0_31 = arith.constant 0 : index
    %c0_32 = arith.constant 0 : index
    %45 = vector.load %arg4[%c4, %c0_31, %c0_32] : memref<9x16x16xf32, #tpu.memory_space<vmem>>, vector<1x16x16xf32>
    %46 = vector.shape_cast %45 : vector<1x16x16xf32> to vector<16x16xf32>
    %cst_33 = arith.constant dense<0.000000e+00> : vector<16x256xf32>
    %47 = tpu.matmul %46, %7, %cst_33 {dimension_numbers = #tpu.dot_dimension_numbers<[1], [0], [0], [1], [0, 0, 1, 1], [], []>} : vector<16x16xf32>, vector<16x256xf32>, vector<16x256xf32> -> vector<16x256xf32>
    %48 = arith.addf %44, %47 : vector<16x256xf32>
    %c255_i32 = arith.constant 255 : i32
    %49 = tpu.dynamic_rotate %7 by %c255_i32 dim 1 : vector<16x256xf32>, i32 -> vector<16x256xf32>
    %c5 = arith.constant 5 : index
    %c0_34 = arith.constant 0 : index
    %c0_35 = arith.constant 0 : index
    %50 = vector.load %arg6[%c5, %c0_34, %c0_35] : memref<9x1x256xf32, #tpu.memory_space<vmem>>, vector<1x1x256xf32>
    %51 = vector.shape_cast %50 : vector<1x1x256xf32> to vector<1x256xf32>
    %52 = vector.broadcast %51 : vector<1x256xf32> to vector<16x256xf32>
    %53 = arith.mulf %49, %52 : vector<16x256xf32>
    %c5_36 = arith.constant 5 : index
    %c0_37 = arith.constant 0 : index
    %c0_38 = arith.constant 0 : index
    %54 = vector.load %arg4[%c5_36, %c0_37, %c0_38] : memref<9x16x16xf32, #tpu.memory_space<vmem>>, vector<1x16x16xf32>
    %55 = vector.shape_cast %54 : vector<1x16x16xf32> to vector<16x16xf32>
    %cst_39 = arith.constant dense<0.000000e+00> : vector<16x256xf32>
    %56 = tpu.matmul %55, %53, %cst_39 {dimension_numbers = #tpu.dot_dimension_numbers<[1], [0], [0], [1], [0, 0, 1, 1], [], []>} : vector<16x16xf32>, vector<16x256xf32>, vector<16x256xf32> -> vector<16x256xf32>
    %57 = arith.addf %48, %56 : vector<16x256xf32>
    %c241_i32 = arith.constant 241 : i32
    %58 = tpu.dynamic_rotate %7 by %c241_i32 dim 1 : vector<16x256xf32>, i32 -> vector<16x256xf32>
    %c6 = arith.constant 6 : index
    %c0_40 = arith.constant 0 : index
    %c0_41 = arith.constant 0 : index
    %59 = vector.load %arg6[%c6, %c0_40, %c0_41] : memref<9x1x256xf32, #tpu.memory_space<vmem>>, vector<1x1x256xf32>
    %60 = vector.shape_cast %59 : vector<1x1x256xf32> to vector<1x256xf32>
    %61 = vector.broadcast %60 : vector<1x256xf32> to vector<16x256xf32>
    %62 = arith.mulf %58, %61 : vector<16x256xf32>
    %c6_42 = arith.constant 6 : index
    %c0_43 = arith.constant 0 : index
    %c0_44 = arith.constant 0 : index
    %63 = vector.load %arg4[%c6_42, %c0_43, %c0_44] : memref<9x16x16xf32, #tpu.memory_space<vmem>>, vector<1x16x16xf32>
    %64 = vector.shape_cast %63 : vector<1x16x16xf32> to vector<16x16xf32>
    %cst_45 = arith.constant dense<0.000000e+00> : vector<16x256xf32>
    %65 = tpu.matmul %64, %62, %cst_45 {dimension_numbers = #tpu.dot_dimension_numbers<[1], [0], [0], [1], [0, 0, 1, 1], [], []>} : vector<16x16xf32>, vector<16x256xf32>, vector<16x256xf32> -> vector<16x256xf32>
    %66 = arith.addf %57, %65 : vector<16x256xf32>
    %c240_i32 = arith.constant 240 : i32
    %67 = tpu.dynamic_rotate %7 by %c240_i32 dim 1 : vector<16x256xf32>, i32 -> vector<16x256xf32>
    %c7 = arith.constant 7 : index
    %c0_46 = arith.constant 0 : index
    %c0_47 = arith.constant 0 : index
    %68 = vector.load %arg6[%c7, %c0_46, %c0_47] : memref<9x1x256xf32, #tpu.memory_space<vmem>>, vector<1x1x256xf32>
    %69 = vector.shape_cast %68 : vector<1x1x256xf32> to vector<1x256xf32>
    %70 = vector.broadcast %69 : vector<1x256xf32> to vector<16x256xf32>
    %71 = arith.mulf %67, %70 : vector<16x256xf32>
    %c7_48 = arith.constant 7 : index
    %c0_49 = arith.constant 0 : index
    %c0_50 = arith.constant 0 : index
    %72 = vector.load %arg4[%c7_48, %c0_49, %c0_50] : memref<9x16x16xf32, #tpu.memory_space<vmem>>, vector<1x16x16xf32>
    %73 = vector.shape_cast %72 : vector<1x16x16xf32> to vector<16x16xf32>
    %cst_51 = arith.constant dense<0.000000e+00> : vector<16x256xf32>
    %74 = tpu.matmul %73, %71, %cst_51 {dimension_numbers = #tpu.dot_dimension_numbers<[1], [0], [0], [1], [0, 0, 1, 1], [], []>} : vector<16x16xf32>, vector<16x256xf32>, vector<16x256xf32> -> vector<16x256xf32>
    %75 = arith.addf %66, %74 : vector<16x256xf32>
    %c239_i32 = arith.constant 239 : i32
    %76 = tpu.dynamic_rotate %7 by %c239_i32 dim 1 : vector<16x256xf32>, i32 -> vector<16x256xf32>
    %c8 = arith.constant 8 : index
    %c0_52 = arith.constant 0 : index
    %c0_53 = arith.constant 0 : index
    %77 = vector.load %arg6[%c8, %c0_52, %c0_53] : memref<9x1x256xf32, #tpu.memory_space<vmem>>, vector<1x1x256xf32>
    %78 = vector.shape_cast %77 : vector<1x1x256xf32> to vector<1x256xf32>
    %79 = vector.broadcast %78 : vector<1x256xf32> to vector<16x256xf32>
    %80 = arith.mulf %76, %79 : vector<16x256xf32>
    %c8_54 = arith.constant 8 : index
    %c0_55 = arith.constant 0 : index
    %c0_56 = arith.constant 0 : index
    %81 = vector.load %arg4[%c8_54, %c0_55, %c0_56] : memref<9x16x16xf32, #tpu.memory_space<vmem>>, vector<1x16x16xf32>
    %82 = vector.shape_cast %81 : vector<1x16x16xf32> to vector<16x16xf32>
    %cst_57 = arith.constant dense<0.000000e+00> : vector<16x256xf32>
    %83 = tpu.matmul %82, %80, %cst_57 {dimension_numbers = #tpu.dot_dimension_numbers<[1], [0], [0], [1], [0, 0, 1, 1], [], []>} : vector<16x16xf32>, vector<16x256xf32>, vector<16x256xf32> -> vector<16x256xf32>
    %84 = arith.addf %75, %83 : vector<16x256xf32>
    %cst_58 = arith.constant 0.000000e+00 : f32
    %85 = vector.broadcast %cst_58 : f32 to vector<16x256xf32>
    %86 = arith.cmpf oge, %84, %85 : vector<16x256xf32>
    %c0_59 = arith.constant 0 : index
    %c0_60 = arith.constant 0 : index
    %87 = vector.load %arg5[%c0_59, %c0_60] : memref<16x1xf32, #tpu.memory_space<vmem>>, vector<16x1xf32>
    %88 = vector.broadcast %87 : vector<16x1xf32> to vector<16x256xf32>
    %89 = arith.mulf %84, %88 : vector<16x256xf32>
    %90 = arith.select %86, %84, %89 : vector<16x256xi1>, vector<16x256xf32>
    %91 = arith.addf %1, %90 : vector<16x256xf32>
    %c0_61 = arith.constant 0 : index
    %c0_62 = arith.constant 0 : index
    %c0_63 = arith.constant 0 : index
    %92 = vector.load %arg7[%c0_61, %c0_62, %c0_63] : memref<1x16x256xf32, #tpu.memory_space<vmem>>, vector<1x16x256xf32>
    %93 = vector.shape_cast %92 : vector<1x16x256xf32> to vector<16x256xf32>
    %94 = vector.shape_cast %91 : vector<16x256xf32> to vector<1x16x256xf32>
    tpu.vector_store %arg7[%c0_61, %c0_62, %c0_63], %94 {strides = array<i32>} : memref<1x16x256xf32, #tpu.memory_space<vmem>>, vector<1x16x256xf32>,
    return
  }
  func.func @transform_0(%arg0: i32) -> (i32, i32, i32) {
    %c0_i32 = arith.constant 0 : i32
    %c0_i32_0 = arith.constant 0 : i32
    %c0_i32_1 = arith.constant 0 : i32
    return %arg0, %c0_i32, %c0_i32_0 : i32, i32, i32
  }
  func.func @transform_1(%arg0: i32) -> (i32, i32) {
    %c0_i32 = arith.constant 0 : i32
    %c0_i32_0 = arith.constant 0 : i32
    %c0_i32_1 = arith.constant 0 : i32
    return %c0_i32, %c0_i32_0 : i32, i32
  }
  func.func @transform_2(%arg0: i32) -> (i32, i32) {
    %c0_i32 = arith.constant 0 : i32
    %c0_i32_0 = arith.constant 0 : i32
    %c0_i32_1 = arith.constant 0 : i32
    return %c0_i32, %c0_i32_0 : i32, i32
  }
  func.func @transform_3(%arg0: i32) -> (i32, i32, i32) {
    %c0_i32 = arith.constant 0 : i32
    %c0_i32_0 = arith.constant 0 : i32
    %c0_i32_1 = arith.constant 0 : i32
    %c0_i32_2 = arith.constant 0 : i32
    return %c0_i32, %c0_i32_0, %c0_i32_1 : i32, i32, i32
  }
  func.func @transform_4(%arg0: i32) -> (i32, i32) {
    %c0_i32 = arith.constant 0 : i32
    %c0_i32_0 = arith.constant 0 : i32
    %c0_i32_1 = arith.constant 0 : i32
    return %c0_i32, %c0_i32_0 : i32, i32
  }
  func.func @transform_5(%arg0: i32) -> (i32, i32, i32) {
    %c0_i32 = arith.constant 0 : i32
    %c0_i32_0 = arith.constant 0 : i32
    %c0_i32_1 = arith.constant 0 : i32
    %c0_i32_2 = arith.constant 0 : i32
    return %c0_i32, %c0_i32_0, %c0_i32_1 : i32, i32, i32
  }
  func.func @transform_6(%arg0: i32) -> (i32, i32, i32) {
    %c0_i32 = arith.constant 0 : i32
    %c0_i32_0 = arith.constant 0 : i32
    %c0_i32_1 = arith.constant 0 : i32
    return %arg0, %c0_i32, %c0_i32_0 : i32, i32, i32
  }
}

</mosaic_0001>

<bundles_post_ra>
// kernel: sepconv_forward.1
= control target key start
LH: loop header
LB: loop body
LE: loop exit
PB: predicated region body
PF: predicated region fallthrough
CT: control target
= control target key end

     0   :  { %s1238_s21 = smov 0   ;;  %s1504_s0 = inlined_call_operand.vmem [shape: f32[2,16,256], index: 0, kind: input, shape index: {}]   ;;  %s1505_s1 = inlined_call_operand.vmem [shape: f32[16,1], index: 1, kind: input, shape index: {}]   ;;  %s1506_s2 = inlined_call_operand.vmem [shape: f32[16,1], index: 2, kind: input, shape index: {}]   ;;  %s1507_s3 = inlined_call_operand.vmem [shape: f32[9,16,16], index: 3, kind: input, shape index: {}]   ;;  %s1508_s4 = inlined_call_operand.vmem [shape: f32[16,1], index: 4, kind: input, shape index: {}]   ;;  %s1509_s5 = inlined_call_operand.vmem [shape: f32[9,1,256], index: 5, kind: input, shape index: {}]   ;;  %s1510_s6 = inlined_call_operand.vmem [shape: f32[2,16,256], index: 6, kind: output, shape index: {}]  }
   0x1 LB: > { %s1091_s22 = sadd.s32 4294967295, %s1192_s21   ;;  %p1095_p0 = scmp.ge.s32.totalorder %s1192_s21, 1  ;;  %s1192_s21 = sphi %s1238_s21, %s16_s21  }
   0x2   : > { %p212_p1 = scmp.lt.s32.totalorder %s1192_s21, 3 }
   0x4   : > { %p213_p2 = pnand %p1095_p0, %p212_p1 }
   0x5   : > { %p242_p3 = scmp.lt.s32.totalorder (!%p213_p2), %s1091_s22, 1  ;;  %s1195_s11 = smov (!%p213_p2), 16  }
   0x6   : > { %216 = sbr.rel (%p213_p2) target bundleno = 478 (0x1de), region = 44  ;;  %s1196_s12 = smov (!%p213_p2), 17  }
   0x7   : > { %s1197_s13 = smov (!%p213_p2), 15   ;;  %s1198_s14 = smov (!%p213_p2), 1  }
   0x8   : > { %s1199_s15 = smov (!%p213_p2), 127   ;;  %s1200_s16 = smov (!%p213_p2), 113  }
   0x9   : > { %s1201_s17 = smov (!%p213_p2), 112   ;;  %s1202_s18 = smov (!%p213_p2), 111  }
   0xb   : > { %v273_v0 = vld [vmem:[%s1506_s2 + $0x8] sm:$0xff]  ;;  %v1194_v2 = vmov 0   ;;  %v272_v3 = vld [vmem:[%s1506_s2] sm:$0xff]  ;;  %s1512_s22 = smov (!%p242_p3, %s1091_s22), 1  ;;  %v296_v23 = vlaneseq  ;;  %v1102_v43 = vld [vmem:[%s1507_s3 + $0x18] sm:$0xff]  ;;  %vm342_vm1 = vcmask 130048  }
   0xc   : > { %v257_v1 = vld [vmem:[%s1505_s1 + $0x8] sm:$0xff]  ;;  %1185 = vset.pattern.permute.xlu1 %v1194_v2  ;;  %1184 = vset.pattern.permute.xlu0 %v1194_v2  ;;  %v256_v4 = vld [vmem:[%s1505_s1] sm:$0xff]  ;;  %s1161_s7 = sshll.u32 %s1512_s22, 5  ;;  %v1101_v45 = vld [vmem:[%s1507_s3 + $0x10] sm:$0xff] }
   0xd   : > { %281 = vperm.xlu1 %1185, %v273_v0   ;;  %265 = vperm.xlu0 %1184, %v257_v1   ;;  %s246_s10 = scalar_lea.vmem %s1504_s0, %s1161_s7  ;;  %v1009_v21 = vld [vmem:[%s1508_s4 + $0x8] sm:$0xff]  ;;  %v1008_v22 = vld [vmem:[%s1508_s4] sm:$0xff]  ;;  %v1324_v25 = vand.u32 127, %v296_v23 }
   0xe   : > { %v1266_v5 = vld [vmem:[%s246_s10 + $0x10] sm:$0xff]  ;;  %v1271_v10 = vld [vmem:[%s246_s10 + $0x18] sm:$0xff]  ;;  %v1274_v11 = vld [vmem:[%s246_s10] sm:$0xff] }
   0xf   : > { %v1276_v12 = vld [vmem:[%s246_s10 + $0x8] sm:$0xff]  ;;  %v1100_v26 = vld [vmem:[%s1509_s5 + $0x2] sm:$0x3]  ;;  %vm323_vm0 = vcmp.lt.s32.totalorder %v1324_v25, 16  ;;  %v303_v44 = vld [vmem:[%s1509_s5] sm:$0x3] }
  0x10   : > { %v331_v27 = vperm.slane %v1100_v26, 0  ;;  %v332_v28 = vperm.slane %v1100_v26, 1  ;;  %vm298_vm2 = vcmp.lt.s32.totalorder %v1324_v25, 17  ;;  %v305_v46 = vperm.slane %v303_v44, 0  ;;  %v1111_v56 = vld [vmem:[%s1509_s5 + $0x4] sm:$0x3] }
  0x11   : > { %v306_v47 = vperm.slane %v303_v44, 1  ;;  %v313_v59 = vld [vmem:[%s1507_s3] sm:$0xff]  ;;  %vm455_vm3 = vcmp.lt.s32.totalorder %v1324_v25, 15  ;;  %v463_v61 = vperm.slane %v1111_v56, 0  ;;  %v464_v62 = vperm.slane %v1111_v56, 1 }
  0x12   : > { %vm538_vm4 = vcmp.lt.s32.totalorder %v1324_v25, 1  ;;  %vm680_vm5 = vcmp.lt.s32.totalorder %v1324_v25, 127  ;;  %vm763_vm6 = vcmp.lt.s32.totalorder %v1324_v25, 113  ;;  %vm846_vm7 = vcmp.lt.s32.totalorder %v1324_v25, 112 }
  0x13   : > { %vm929_vm8 = vcmp.lt.s32.totalorder %v1324_v25, 111  ;;  %v1153_v25 = vld [vmem:[%s1507_s3 + $0x80] sm:$0xff] }
  0x15   : > { %276 = vperm.xlu1 %1185, %v272_v3   ;;  %260 = vperm.xlu0 %1184, %v256_v4  }
  0x7f   : > { %v282_v6 = vpop.permute.xlu1 %281  ;;  %v266_v7 = vpop.permute.xlu0 %265 }
  0x80   : > { %v270_v8 = vmul.f32 %v266_v7, %v1266_v5  ;;  %v271_v13 = vmul.f32 %v266_v7, %v1271_v10  ;;  %v314_v7 = vld [vmem:[%s1507_s3 + $0x8] sm:$0xff] }
  0x82   : > { %v1269_v9 = vadd.f32 %v282_v6, %v270_v8  ;;  %v1281_v18 = vadd.f32 %v282_v6, %v271_v13  ;;  %v1118_v6 = vld [vmem:[%s1509_s5 + $0x6] sm:$0x3] }
  0x83   : > { %v546_v8 = vperm.slane %v1118_v6, 0  ;;  %v547_v13 = vperm.slane %v1118_v6, 1 }
  0x84   : > { %317 = vrot.lane.b32.xlu2 %v1269_v9, %s1195_s11 }
  0x87   : > { %v261_v14 = vpop.permute.xlu0 %260  ;;  %v277_v17 = vpop.permute.xlu1 %276 }
  0x88   : > { %v268_v15 = vmul.f32 %v261_v14, %v1274_v11  ;;  %v269_v16 = vmul.f32 %v261_v14, %v1276_v12 }
  0x8a   : > { %v1283_v19 = vadd.f32 %v277_v17, %v268_v15  ;;  %v1285_v20 = vadd.f32 %v277_v17, %v269_v16 }
  0x8c   : > { %321 = vrot.lane.b32.xlu2 %v1281_v18, %s1195_s11  ;;  %319 = vrot.lane.b32.xlu1 %v1285_v20, %s1195_s11 }
  0x8d   : > { %315 = vrot.lane.b32.xlu0 %v1283_v19, %s1195_s11 }
  0x94   : > { %290 = vrot.lane.b32.xlu2 %v1269_v9, %s1196_s12  ;;  %288 = vrot.lane.b32.xlu1 %v1283_v19, %s1196_s12 }
  0x95   : > { %294 = vrot.lane.b32.xlu0 %v1281_v18, %s1196_s12 }
  0x9c   : > { %292 = vrot.lane.b32.xlu2 %v1285_v20, %s1196_s12  ;;  %453 = vrot.lane.b32.xlu1 %v1281_v18, %s1197_s13 }
  0x9d   : > { %449 = vrot.lane.b32.xlu0 %v1269_v9, %s1197_s13 }
  0xa4   : > { %447 = vrot.lane.b32.xlu2 %v1283_v19, %s1197_s13  ;;  %532 = vrot.lane.b32.xlu1 %v1269_v9, %s1198_s14 }
  0xa5   : > { %451 = vrot.lane.b32.xlu0 %v1285_v20, %s1197_s13 }
  0xac   : > { %536 = vrot.lane.b32.xlu2 %v1281_v18, %s1198_s14  ;;  %534 = vrot.lane.b32.xlu1 %v1285_v20, %s1198_s14 }
  0xad   : > { %530 = vrot.lane.b32.xlu0 %v1283_v19, %s1198_s14  ;;  %s251_s14 = scalar_lea.vmem %s1510_s6, %s1161_s7 }
  0xb4   : > { %674 = vrot.lane.b32.xlu2 %v1269_v9, %s1199_s15  ;;  %672 = vrot.lane.b32.xlu1 %v1283_v19, %s1199_s15 }
  0xb5   : > { %678 = vrot.lane.b32.xlu0 %v1281_v18, %s1199_s15 }
  0xbc   : > { %676 = vrot.lane.b32.xlu2 %v1285_v20, %s1199_s15  ;;  %761 = vrot.lane.b32.xlu1 %v1281_v18, %s1200_s16 }
  0xbd   : > { %757 = vrot.lane.b32.xlu0 %v1269_v9, %s1200_s16 }
  0xc4   : > { %755 = vrot.lane.b32.xlu2 %v1283_v19, %s1200_s16  ;;  %840 = vrot.lane.b32.xlu1 %v1269_v9, %s1201_s17 }
  0xc5   : > { %759 = vrot.lane.b32.xlu0 %v1285_v20, %s1200_s16 }
  0xcc   : > { %844 = vrot.lane.b32.xlu2 %v1281_v18, %s1201_s17  ;;  %842 = vrot.lane.b32.xlu1 %v1285_v20, %s1201_s17 }
  0xcd   : > { %838 = vrot.lane.b32.xlu0 %v1283_v19, %s1201_s17 }
  0xd4   : > { %923 = vrot.lane.b32.xlu2 %v1269_v9, %s1202_s18  ;;  %921 = vrot.lane.b32.xlu1 %v1283_v19, %s1202_s18 }
  0xd5   : > { %927 = vrot.lane.b32.xlu0 %v1281_v18, %s1202_s18 }
  0xdc   : > { %925 = vrot.lane.b32.xlu2 %v1285_v20, %s1202_s18  ;;  %1017 = vperm.xlu1 %1185, %v1009_v21  }
  0xdd   : > { %1012 = vperm.xlu0 %1184, %v1008_v22  }
  0xde   : > { %v318_v24 = vpop.permute.xlu2 %317 }
  0xe6   : > { %v322_v29 = vpop.permute.xlu2 %321 }
  0xe7   : > { %v325_v30 = vsel %vm323_vm0, %v318_v24, %v322_v29  ;;  %v327_v31 = vsel %vm323_vm0, %v322_v29, %v318_v24  ;;  %v1112_v29 = vld [vmem:[%s1507_s3 + $0x20] sm:$0xff] }
  0xe8   : > { %v337_v32 = vmul.f32 %v331_v27, %v327_v31  ;;  %v338_v33 = vmul.f32 %v332_v28, %v325_v30 }
  0xea   : > { %363 = vmatpush.msra.mxu0 %v337_v32  ;;  %1163 = vmatpush.msra.mxu2 %v337_v32 }
  0xeb   : > { %386 = vmatpush.msra.mxu1 %v338_v33  ;;  %1165 = vmatpush.msra.mxu3 %v338_v33 }
  0xee   : > { %v291_v34 = vpop.permute.xlu2 %290 }
  0xf6   : > { %v293_v35 = vpop.permute.xlu2 %292 }
  0xfe   : > { %v320_v36 = vpop.permute.xlu1 %319  ;;  %v448_v42 = vpop.permute.xlu2 %447 }
  0xff   : > { %v316_v37 = vpop.permute.xlu0 %315 }
 0x100   : > { %v324_v38 = vsel %vm323_vm0, %v316_v37, %v320_v36  ;;  %v326_v39 = vsel %vm323_vm0, %v320_v36, %v316_v37 }
 0x101   : > { %v335_v40 = vmul.f32 %v331_v27, %v326_v39  ;;  %v336_v41 = vmul.f32 %v332_v28, %v324_v38 }
 0x103   : > { %364 = vmatpush.msra.mxu0 %v335_v40  ;;  %1164 = vmatpush.msra.mxu2 %v335_v40 }
 0x104   : > { %387 = vmatpush.msra.mxu1 %v336_v41  ;;  %1166 = vmatpush.msra.mxu3 %v336_v41 }
 0x105   : > { %1104 = vmatmul.msk.f32.vlgmr.msra.gmra.mxu2 %vm342_vm1, %v1102_v43  ;;  %1106 = vmatmul.msk.f32.vlgmr.msra.gmra.mxu3 %vm342_vm1, %v1102_v43 }
 0x106   : > { %v289_v48 = vpop.permute.xlu1 %288  ;;  %1103 = vmatmul.msk.f32.vlgmr.msra.gmra.mxu0 %vm342_vm1, %v1101_v45  ;;  %1105 = vmatmul.msk.f32.vlgmr.msra.gmra.mxu1 %vm342_vm1, %v1101_v45  ;;  %v537_v60 = vpop.permute.xlu2 %536 }
 0x107   : > { %v295_v49 = vpop.permute.xlu0 %294  ;;  %v299_v50 = vsel %vm298_vm2, %v289_v48, %v293_v35  ;;  %v301_v51 = vsel %vm298_vm2, %v293_v35, %v289_v48  ;;  %v1120_v48 = vld [vmem:[%s1507_s3 + $0x38] sm:$0xff] }
 0x108   : > { %v300_v52 = vsel %vm298_vm2, %v291_v34, %v295_v49  ;;  %v302_v53 = vsel %vm298_vm2, %v295_v49, %v291_v34  ;;  %v309_v57 = vmul.f32 %v305_v46, %v301_v51  ;;  %v310_v58 = vmul.f32 %v306_v47, %v299_v50  ;;  %v1138_v49 = vld [vmem:[%s1509_s5 + $0xc] sm:$0x3] }
 0x109   : > { %v311_v54 = vmul.f32 %v305_v46, %v302_v53  ;;  %v312_v55 = vmul.f32 %v306_v47, %v300_v52  ;;  %v1125_v46 = vld [vmem:[%s1507_s3 + $0x40] sm:$0xff]  ;;  %v771_v52 = vperm.slane %v1138_v49, 0  ;;  %v772_v53 = vperm.slane %v1138_v49, 1 }
 0x10b   : > { %415 = vmatpush.msrb.mxu2 %v311_v54  ;;  %438 = vmatpush.msrb.mxu3 %v312_v55 }
 0x10d   : > { %416 = vmatpush.msrb.mxu2 %v309_v57  ;;  %439 = vmatpush.msrb.mxu3 %v310_v58 }
 0x10e   : > { %v454_v63 = vpop.permute.xlu1 %453  ;;  %1107 = vmatmul.msk.f32.vlgmr.msrb.gmra.mxu2 %vm342_vm1, %v313_v59  ;;  %1109 = vmatmul.msk.f32.vlgmr.msrb.gmra.mxu3 %vm342_vm1, %v313_v59  ;;  %v675_v14 = vpop.permute.xlu2 %674 }
 0x10f   : > { %v450_v0 = vpop.permute.xlu0 %449 }
 0x110   : > { %v457_v1 = vsel %vm455_vm3, %v450_v0, %v454_v63  ;;  %v459_v2 = vsel %vm455_vm3, %v454_v63, %v450_v0 }
 0x111   : > { %v469_v3 = vmul.f32 %v463_v61, %v459_v2  ;;  %v470_v4 = vmul.f32 %v464_v62, %v457_v1 }
 0x113   : > { %494 = vmatpush.msrb.mxu0 %v469_v3  ;;  %517 = vmatpush.msrb.mxu1 %v470_v4 }
 0x116   : > { %v533_v15 = vpop.permute.xlu1 %532  ;;  %1108 = vmatmul.msk.f32.gmra.mxu2 %vm342_vm1, %v314_v7  ;;  %1110 = vmatmul.msk.f32.gmra.mxu3 %vm342_vm1, %v314_v7  ;;  %v677_v32 = vpop.permute.xlu2 %676 }
 0x117   : > { %v540_v16 = vsel %vm538_vm4, %v533_v15, %v537_v60  ;;  %v542_v17 = vsel %vm538_vm4, %v537_v60, %v533_v15  ;;  %v452_v21 = vpop.permute.xlu0 %451  ;;  %v1126_v60 = vld [vmem:[%s1507_s3 + $0x48] sm:$0xff] }
 0x118   : > { %v552_v22 = vmul.f32 %v546_v8, %v542_v17  ;;  %v553_v23 = vmul.f32 %v547_v13, %v540_v16  ;;  %v456_v24 = vsel %vm455_vm3, %v448_v42, %v452_v21  ;;  %v458_v26 = vsel %vm455_vm3, %v452_v21, %v448_v42  ;;  %v1139_v17 = vld [vmem:[%s1507_s3 + $0x60] sm:$0xff]  ;;  %v1133_v21 = vld [vmem:[%s1507_s3 + $0x58] sm:$0xff] }
 0x119   : > { %v467_v27 = vmul.f32 %v463_v61, %v458_v26  ;;  %v468_v28 = vmul.f32 %v464_v62, %v456_v24  ;;  %v1145_v61 = vld [vmem:[%s1509_s5 + $0xe] sm:$0x3]  ;;  %v1132_v62 = vld [vmem:[%s1507_s3 + $0x50] sm:$0xff] }
 0x11a   : > { %577 = vmatpush.msra.mxu2 %v552_v22  ;;  %600 = vmatpush.msra.mxu3 %v553_v23  ;;  %v854_v0 = vperm.slane %v1145_v61, 0  ;;  %v855_v1 = vperm.slane %v1145_v61, 1 }
 0x11b   : > { %495 = vmatpush.msrb.mxu0 %v467_v27  ;;  %518 = vmatpush.msrb.mxu1 %v468_v28 }
 0x11c   : > { %1114 = vmatmul.msk.f32.vlgmr.msrb.gmra.mxu0 %vm342_vm1, %v1112_v29  ;;  %1116 = vmatmul.msk.f32.vlgmr.msrb.gmra.mxu1 %vm342_vm1, %v1112_v29 }
 0x11d   : > { %636 = vmatpush.msra.mxu0 %v1269_v9  ;;  %659 = vmatpush.msra.mxu1 %v1281_v18  ;;  %v1113_v9 = vld [vmem:[%s1507_s3 + $0x28] sm:$0xff]  ;;  %v1119_v18 = vld [vmem:[%s1507_s3 + $0x30] sm:$0xff] }
 0x11e   : > { %v535_v30 = vpop.permute.xlu1 %534  ;;  %v756_v47 = vpop.permute.xlu2 %755 }
 0x11f   : > { %637 = vmatpush.msra.mxu0 %v1283_v19  ;;  %660 = vmatpush.msra.mxu1 %v1285_v20  ;;  %v531_v31 = vpop.permute.xlu0 %530  ;;  %v1131_v19 = vld [vmem:[%s1509_s5 + $0xa] sm:$0x3] }
 0x120   : > { %v539_v33 = vsel %vm538_vm4, %v531_v31, %v535_v30  ;;  %v541_v34 = vsel %vm538_vm4, %v535_v30, %v531_v31  ;;  %v688_v20 = vperm.slane %v1131_v19, 0  ;;  %v689_v37 = vperm.slane %v1131_v19, 1  ;;  %v1140_v30 = vld [vmem:[%s1507_s3 + $0x68] sm:$0xff]  ;;  %v1146_v31 = vld [vmem:[%s1507_s3 + $0x70] sm:$0xff] }
 0x121   : > { %v550_v35 = vmul.f32 %v546_v8, %v541_v34  ;;  %v551_v36 = vmul.f32 %v547_v13, %v539_v33 }
 0x123   : > { %578 = vmatpush.msra.mxu2 %v550_v35  ;;  %601 = vmatpush.msra.mxu3 %v551_v36 }
 0x124   : > { %1115 = vmatmul.msk.f32.gmra.mxu0 %vm342_vm1, %v1113_v9  ;;  %1117 = vmatmul.msk.f32.gmra.mxu1 %vm342_vm1, %v1113_v9 }
 0x125   : > { %1121 = vmatmul.msk.f32.vlgmr.msra.gmra.mxu2 %vm342_vm1, %v1119_v18  ;;  %1123 = vmatmul.msk.f32.vlgmr.msra.gmra.mxu3 %vm342_vm1, %v1119_v18 }
 0x126   : > { %v673_v38 = vpop.permute.xlu1 %672  ;;  %v845_v63 = vpop.permute.xlu2 %844 }
 0x127   : > { %v679_v39 = vpop.permute.xlu0 %678  ;;  %v681_v42 = vsel %vm680_vm5, %v673_v38, %v677_v32  ;;  %v683_v43 = vsel %vm680_vm5, %v677_v32, %v673_v38  ;;  %v1152_v32 = vld [vmem:[%s1509_s5 + $0x10] sm:$0x3] }
 0x128   : > { %v682_v40 = vsel %vm680_vm5, %v675_v14, %v679_v39  ;;  %v684_v41 = vsel %vm680_vm5, %v679_v39, %v675_v14  ;;  %v692_v50 = vmul.f32 %v688_v20, %v681_v42  ;;  %v693_v51 = vmul.f32 %v689_v37, %v683_v43  ;;  %v1154_v43 = vld [vmem:[%s1507_s3 + $0x88] sm:$0xff] }
 0x129   : > { %v694_v44 = vmul.f32 %v688_v20, %v682_v40  ;;  %v695_v45 = vmul.f32 %v689_v37, %v684_v41  ;;  %v937_v33 = vperm.slane %v1152_v32, 0  ;;  %v938_v34 = vperm.slane %v1152_v32, 1  ;;  %v1147_v40 = vld [vmem:[%s1507_s3 + $0x78] sm:$0xff] }
 0x12b   : > { %719 = vmatpush.msrb.mxu2 %v694_v44  ;;  %742 = vmatpush.msrb.mxu3 %v695_v45 }
 0x12c   : > { %1127 = vmatmul.msk.f32.vlgmr.msra.gmra.mxu0 %vm342_vm1, %v1125_v46  ;;  %1129 = vmatmul.msk.f32.vlgmr.msra.gmra.mxu1 %vm342_vm1, %v1125_v46 }
 0x12d   : > { %1122 = vmatmul.msk.f32.gmra.mxu2 %vm342_vm1, %v1120_v48  ;;  %1124 = vmatmul.msk.f32.gmra.mxu3 %vm342_vm1, %v1120_v48 }
 0x12e   : > { %720 = vmatpush.msrb.mxu2 %v692_v50  ;;  %743 = vmatpush.msrb.mxu3 %v693_v51  ;;  %v762_v54 = vpop.permute.xlu1 %761  ;;  %v924_v22 = vpop.permute.xlu2 %923 }
 0x12f   : > { %v758_v55 = vpop.permute.xlu0 %757 }
 0x130   : > { %v765_v56 = vsel %vm763_vm6, %v758_v55, %v762_v54  ;;  %v767_v57 = vsel %vm763_vm6, %v762_v54, %v758_v55 }
 0x131   : > { %v777_v58 = vmul.f32 %v771_v52, %v765_v56  ;;  %v778_v59 = vmul.f32 %v772_v53, %v767_v57 }
 0x133   : > { %802 = vmatpush.msrb.mxu0 %v777_v58  ;;  %825 = vmatpush.msrb.mxu1 %v778_v59 }
 0x134   : > { %1128 = vmatmul.msk.f32.gmra.mxu0 %vm342_vm1, %v1126_v60  ;;  %1130 = vmatmul.msk.f32.gmra.mxu1 %vm342_vm1, %v1126_v60 }
 0x135   : > { %1134 = vmatmul.msk.f32.vlgmr.msrb.gmra.mxu2 %vm342_vm1, %v1132_v62  ;;  %1136 = vmatmul.msk.f32.vlgmr.msrb.gmra.mxu3 %vm342_vm1, %v1132_v62 }
 0x136   : > { %v841_v2 = vpop.permute.xlu1 %840  ;;  %v926_v9 = vpop.permute.xlu2 %925 }
 0x137   : > { %v848_v3 = vsel %vm846_vm7, %v841_v2, %v845_v63  ;;  %v850_v4 = vsel %vm846_vm7, %v845_v63, %v841_v2  ;;  %v760_v6 = vpop.permute.xlu0 %759 }
 0x138   : > { %v860_v7 = vmul.f32 %v854_v0, %v848_v3  ;;  %v861_v8 = vmul.f32 %v855_v1, %v850_v4  ;;  %v764_v13 = vsel %vm763_vm6, %v756_v47, %v760_v6  ;;  %v766_v14 = vsel %vm763_vm6, %v760_v6, %v756_v47 }
 0x139   : > { %v775_v15 = vmul.f32 %v771_v52, %v764_v13  ;;  %v776_v16 = vmul.f32 %v772_v53, %v766_v14 }
 0x13a   : > { %885 = vmatpush.msra.mxu2 %v860_v7  ;;  %908 = vmatpush.msra.mxu3 %v861_v8 }
 0x13b   : > { %803 = vmatpush.msrb.mxu0 %v775_v15  ;;  %826 = vmatpush.msrb.mxu1 %v776_v16 }
 0x13c   : > { %1141 = vmatmul.msk.f32.vlgmr.msrb.gmra.mxu0 %vm342_vm1, %v1139_v17  ;;  %1143 = vmatmul.msk.f32.vlgmr.msrb.gmra.mxu1 %vm342_vm1, %v1139_v17 }
 0x13d   : > { %1135 = vmatmul.msk.f32.gmra.mxu2 %vm342_vm1, %v1133_v21  ;;  %1137 = vmatmul.msk.f32.gmra.mxu3 %vm342_vm1, %v1133_v21 }
 0x13e   : > { %v843_v23 = vpop.permute.xlu1 %842 }
 0x13f   : > { %v839_v24 = vpop.permute.xlu0 %838 }
 0x140   : > { %v847_v26 = vsel %vm846_vm7, %v839_v24, %v843_v23  ;;  %v849_v27 = vsel %vm846_vm7, %v843_v23, %v839_v24 }
 0x141   : > { %v858_v28 = vmul.f32 %v854_v0, %v847_v26  ;;  %v859_v29 = vmul.f32 %v855_v1, %v849_v27 }
 0x143   : > { %886 = vmatpush.msra.mxu2 %v858_v28  ;;  %909 = vmatpush.msra.mxu3 %v859_v29 }
 0x144   : > { %1142 = vmatmul.msk.f32.gmra.mxu0 %vm342_vm1, %v1140_v30  ;;  %1144 = vmatmul.msk.f32.gmra.mxu1 %vm342_vm1, %v1140_v30 }
 0x145   : > { %1148 = vmatmul.msk.f32.vlgmr.msra.gmra.mxu2 %vm342_vm1, %v1146_v31  ;;  %1150 = vmatmul.msk.f32.vlgmr.msra.gmra.mxu3 %vm342_vm1, %v1146_v31 }
 0x146   : > { %v922_v35 = vpop.permute.xlu1 %921 }
 0x147   : > { %v928_v36 = vpop.permute.xlu0 %927  ;;  %v930_v20 = vsel %vm929_vm8, %v922_v35, %v926_v9  ;;  %v932_v37 = vsel %vm929_vm8, %v926_v9, %v922_v35 }
 0x148   : > { %v931_v18 = vsel %vm929_vm8, %v924_v22, %v928_v36  ;;  %v933_v19 = vsel %vm929_vm8, %v928_v36, %v924_v22  ;;  %v941_v41 = vmul.f32 %v937_v33, %v930_v20  ;;  %v942_v42 = vmul.f32 %v938_v34, %v932_v37 }
 0x149   : > { %v943_v38 = vmul.f32 %v937_v33, %v931_v18  ;;  %v944_v39 = vmul.f32 %v938_v34, %v933_v19 }
 0x14b   : > { %968 = vmatpush.msra.mxu0 %v943_v38  ;;  %991 = vmatpush.msra.mxu1 %v944_v39 }
 0x14d   : > { %1149 = vmatmul.msk.f32.gmra.mxu2 %vm342_vm1, %v1147_v40  ;;  %1151 = vmatmul.msk.f32.gmra.mxu3 %vm342_vm1, %v1147_v40 }
 0x14e   : > { %969 = vmatpush.msra.mxu0 %v941_v41  ;;  %992 = vmatpush.msra.mxu1 %v942_v42 }
 0x14f   : > { %1155 = vmatmul.msk.f32.vlgmr.msra.gmra.mxu0 %vm342_vm1, %v1153_v25  ;;  %1157 = vmatmul.msk.f32.vlgmr.msra.gmra.mxu1 %vm342_vm1, %v1153_v25  ;;  %v1013_v25 = vpop.permute.xlu0 %1012 }
 0x157   : > { %1156 = vmatmul.msk.f32.gmra.mxu0 %vm342_vm1, %v1154_v43  ;;  %1158 = vmatmul.msk.f32.gmra.mxu1 %vm342_vm1, %v1154_v43 }
 0x183   : > { %v366_v46 = vpop.f32.mrf.mxu0  ;;  %v389_v47 = vpop.f32.mrf.mxu1 }
 0x188   : > { %v369_v44 = vpop.f32.mrf.mxu2  ;;  %v392_v45 = vpop.f32.mrf.mxu3 }
 0x191   : > { %v418_v48 = vpop.f32.mrf.mxu2  ;;  %v441_v49 = vpop.f32.mrf.mxu3 }
 0x192   : > { %v419_v4 = vadd.f32 %v418_v48, %v366_v46  ;;  %v442_v6 = vadd.f32 %v441_v49, %v389_v47 }
 0x199   : > { %v497_v50 = vpop.f32.mrf.mxu0  ;;  %v520_v51 = vpop.f32.mrf.mxu1 }
 0x19a   : > { %v421_v52 = vpop.f32.mrf.mxu2  ;;  %v444_v53 = vpop.f32.mrf.mxu3  ;;  %v526_v7 = vadd.f32 %v497_v50, %v419_v4  ;;  %v527_v8 = vadd.f32 %v520_v51, %v442_v6 }
 0x19b   : > { %v422_v17 = vadd.f32 %v421_v52, %v369_v44  ;;  %v445_v21 = vadd.f32 %v444_v53, %v392_v45 }
 0x1a1   : > { %v500_v54 = vpop.f32.mrf.mxu0  ;;  %v523_v55 = vpop.f32.mrf.mxu1 }
 0x1a2   : > { %v528_v27 = vadd.f32 %v500_v54, %v422_v17  ;;  %v529_v28 = vadd.f32 %v523_v55, %v445_v21 }
 0x1a8   : > { %v580_v56 = vpop.f32.mrf.mxu2  ;;  %v603_v57 = vpop.f32.mrf.mxu3 }
 0x1a9   : > { %v639_v58 = vpop.f32.mrf.mxu0  ;;  %v662_v59 = vpop.f32.mrf.mxu1  ;;  %v609_v13 = vadd.f32 %v580_v56, %v526_v7  ;;  %v610_v14 = vadd.f32 %v603_v57, %v527_v8 }
 0x1ab   : > { %v668_v22 = vadd.f32 %v639_v58, %v609_v13  ;;  %v669_v23 = vadd.f32 %v662_v59, %v610_v14  ;;  %v1018_v59 = vpop.permute.xlu1 %1017 }
 0x1b0   : > { %v583_v60 = vpop.f32.mrf.mxu2  ;;  %v606_v61 = vpop.f32.mrf.mxu3 }
 0x1b1   : > { %v642_v62 = vpop.f32.mrf.mxu0  ;;  %v665_v63 = vpop.f32.mrf.mxu1  ;;  %v611_v31 = vadd.f32 %v583_v60, %v528_v27  ;;  %v612_v32 = vadd.f32 %v606_v61, %v529_v28 }
 0x1b3   : > { %v670_v9 = vadd.f32 %v642_v62, %v611_v31  ;;  %v671_v18 = vadd.f32 %v665_v63, %v612_v32 }
 0x1b8   : > { %v722_v0 = vpop.f32.mrf.mxu2  ;;  %v745_v1 = vpop.f32.mrf.mxu3 }
 0x1b9   : > { %v805_v2 = vpop.f32.mrf.mxu0  ;;  %v828_v3 = vpop.f32.mrf.mxu1  ;;  %v751_v29 = vadd.f32 %v722_v0, %v668_v22  ;;  %v752_v30 = vadd.f32 %v745_v1, %v669_v23 }
 0x1bb   : > { %v834_v35 = vadd.f32 %v805_v2, %v751_v29  ;;  %v835_v36 = vadd.f32 %v828_v3, %v752_v30 }
 0x1c0   : > { %v725_v15 = vpop.f32.mrf.mxu2  ;;  %v748_v16 = vpop.f32.mrf.mxu3 }
 0x1c1   : > { %v808_v24 = vpop.f32.mrf.mxu0  ;;  %v831_v26 = vpop.f32.mrf.mxu1  ;;  %v753_v39 = vadd.f32 %v725_v15, %v670_v9  ;;  %v754_v40 = vadd.f32 %v748_v16, %v671_v18 }
 0x1c3   : > { %v836_v47 = vadd.f32 %v808_v24, %v753_v39  ;;  %v837_v48 = vadd.f32 %v831_v26, %v754_v40 }
 0x1c8   : > { %v888_v33 = vpop.f32.mrf.mxu2  ;;  %v911_v34 = vpop.f32.mrf.mxu3 }
 0x1c9   : > { %v917_v19 = vadd.f32 %v888_v33, %v834_v35  ;;  %v918_v20 = vadd.f32 %v911_v34, %v835_v36 }
 0x1cc   : > { %v971_v37 = vpop.f32.mrf.mxu0  ;;  %v994_v38 = vpop.f32.mrf.mxu1 }
 0x1cd   : > { %v1000_v41 = vadd.f32 %v971_v37, %v917_v19  ;;  %v1001_v42 = vadd.f32 %v994_v38, %v918_v20 }
 0x1cf   : > { %vm1004_vm9 = vcmp.ge.f32.partialorder %v1000_v41, 0.0  ;;  %v1020_v43 = vmul.f32 %v1013_v25, %v1000_v41  ;;  %vm1005_vm10 = vcmp.ge.f32.partialorder %v1001_v42, 0.0  ;;  %v1021_v44 = vmul.f32 %v1013_v25, %v1001_v42 }
 0x1d0   : > { %v891_v45 = vpop.f32.mrf.mxu2  ;;  %v914_v46 = vpop.f32.mrf.mxu3 }
 0x1d1   : > { %v1024_v49 = vsel %vm1004_vm9, %v1000_v41, %v1020_v43  ;;  %v1025_v50 = vsel %vm1005_vm10, %v1001_v42, %v1021_v44  ;;  %v919_v53 = vadd.f32 %v891_v45, %v836_v47  ;;  %v920_v54 = vadd.f32 %v914_v46, %v837_v48 }
 0x1d2   : > { %v1028_v51 = vadd.f32 %v1024_v49, %v1274_v11  ;;  %v1029_v52 = vadd.f32 %v1025_v50, %v1276_v12 }
 0x1d4   : > { %1032 = vst [vmem:[%s251_s14] sm:$0xff] %v1028_v51  ;;  %v974_v55 = vpop.f32.mrf.mxu0  ;;  %v997_v56 = vpop.f32.mrf.mxu1 }
 0x1d5   : > { %1033 = vst [vmem:[%s251_s14 + $0x8] sm:$0xff] %v1029_v52  ;;  %v1002_v57 = vadd.f32 %v974_v55, %v919_v53  ;;  %v1003_v58 = vadd.f32 %v997_v56, %v920_v54 }
 0x1d7   : > { %vm1006_vm11 = vcmp.ge.f32.partialorder %v1002_v57, 0.0  ;;  %v1022_v60 = vmul.f32 %v1018_v59, %v1002_v57  ;;  %vm1007_vm12 = vcmp.ge.f32.partialorder %v1003_v58, 0.0  ;;  %v1023_v61 = vmul.f32 %v1018_v59, %v1003_v58 }
 0x1d9   : > { %v1026_v62 = vsel %vm1006_vm11, %v1002_v57, %v1022_v60  ;;  %v1027_v63 = vsel %vm1007_vm12, %v1003_v58, %v1023_v61 }
 0x1da   : > { %v1030_v0 = vadd.f32 %v1026_v62, %v1266_v5  ;;  %v1031_v11 = vadd.f32 %v1027_v63, %v1271_v10 }
 0x1dc   : > { %1034 = vst [vmem:[%s251_s14 + $0x10] sm:$0xff] %v1030_v0 }
 0x1dd   : > { %1035 = vst [vmem:[%s251_s14 + $0x18] sm:$0xff] %v1031_v11 }
 0x1de PF: > { %s16_s21 = sadd.s32 1, %s1192_s21  }
 0x1df   : > { %p13_p4 = scmp.ge.s32.totalorder %s16_s21, 4  }
 0x1e1   :  { %15 = sbr.rel (!%p13_p4) target bundleno = 1 (0x1), region = 89 }

</bundles_post_ra>
